<compile_context>
chip_gen: v5e
topology: v5e:2x2
jax: 0.10.0
libtpu: 0.0.40
codegen_flags: <defaults>
</compile_context>

<pallas_src>
import jax
import jax.numpy as jnp
from jax.experimental import pallas as pl
from jax.experimental.pallas import tpu as pltpu


# ----------------------------- Pallas kernel ------------------------------

def _out_conv_kernel(x_ref, w_ref, b_ref, o_ref):
    # x_ref: (1, Cin, TM) f32   w_ref: (Cout, Cin) f32   b_ref: (Cout, 1) f32
    # o_ref: (1, Cout, TM) f32
    acc = jnp.dot(w_ref[...], x_ref[0], preferred_element_type=jnp.float32)
    o_ref[0] = acc + b_ref[...]          # fused bias epilogue, f32 throughout


def _round_up(x, m):
    return (x + m - 1) // m * m


def unet_out_block_forward(x, w, b, *, tile_cap=32768,
                           vmem_budget_bytes=24 << 20):
    """UnetOutBlock.forward: 1x1 conv with bias on channels-first input.

    x: (B, Cin, *spatial) f32
    w: (Cout, Cin, 1[, 1, 1])  (PyTorch Conv weight layout)
    b: (Cout,)
    Returns (B, Cout, *spatial) f32.
    """
    B, Cin = int(x.shape[0]), int(x.shape[1])
    spatial = x.shape[2:]
    P = 1
    for s in spatial:
        P *= int(s)
    Cout = int(w.shape[0])

    # Flatten spatial dims; NCHW-native (Cin, P) slabs keep channel mixing a
    # plain GEMM with the spatial size on the lane axis (no transposes, free
    # reshape).
    x2 = x.reshape(B, Cin, P).astype(jnp.float32)
    w2 = w.reshape(Cout, Cin).astype(jnp.float32)
    b2 = b.reshape(Cout, 1).astype(jnp.float32)

    # --- spatial (lane) tile size ---
    # Double-buffered VMEM footprint per lane ~ 2 * 4B * (Cin + Cout); keep it
    # under a budget that fits v7x's 32 MiB scoped-VMEM default with headroom
    # (v5e/v6e have 128 MiB physical, so this is conservative there).
    bytes_per_lane = 4 * (Cin + Cout)
    tm_vmem = max(128, (vmem_budget_bytes // (2 * bytes_per_lane)) // 128 * 128)
    tm = min(tile_cap, tm_vmem, _round_up(P, 128))
    # v7x has 2 TensorCores: when B == 1 make sure the spatial axis still has
    # >= 2 parallel grid steps so both cores get work.
    if B == 1 and P > 128 and (P + tm - 1) // tm < 2:
        tm = max(128, _round_up((P + 1) // 2, 128))

    num_spatial_tiles = (P + tm - 1) // tm   # ragged last tile is masked by Pallas

    out = pl.pallas_call(
        _out_conv_kernel,
        out_shape=jax.ShapeDtypeStruct((B, Cout, P), jnp.float32),
        grid_spec=pltpu.PrefetchScalarGridSpec(
            num_scalar_prefetch=0,
            grid=(B, num_spatial_tiles),
            in_specs=[
                pl.BlockSpec((1, Cin, tm), lambda bi, j: (bi, 0, j)),
                pl.BlockSpec((Cout, Cin), lambda bi, j: (0, 0)),   # full weight, fetched once
                pl.BlockSpec((Cout, 1), lambda bi, j: (0, 0)),     # full bias, fetched once
            ],
            out_specs=pl.BlockSpec((1, Cout, tm), lambda bi, j: (bi, 0, j)),
        ),
        compiler_params=pltpu.CompilerParams(
            dimension_semantics=("parallel", "parallel")),
        # TODO(synk): on v7x, sweeping pipeline_mode=pl.Buffered(3) on the
        # activation BlockSpec can hide per-DMA latency at moderate tile sizes.
    )(x2, w2, b2)

    return out.reshape((B, Cout) + spatial)


# ----------------------------- main ------------------------------

if __name__ == "__main__":
    # Small shapes implied by the module: decoder output with feature_size=8
    # channels mapped to out_channels=2 logits over a 16x16 image, batch 2.
    B, Cin, H, W, Cout = 2, 8, 16, 16, 2

    key = jax.random.PRNGKey(0)
    kx, kw, kb = jax.random.split(key, 3)
    x = jax.random.normal(kx, (B, Cin, H, W), dtype=jnp.float32)
    w = 0.1 * jax.random.normal(kw, (Cout, Cin, 1, 1), dtype=jnp.float32)
    b = 0.1 * jax.random.normal(kb, (Cout,), dtype=jnp.float32)

    fwd = jax.jit(unet_out_block_forward)
    y = jax.block_until_ready(fwd(x, w, b))

    assert y.shape == (B, Cout, H, W), y.shape
    assert bool(jnp.all(jnp.isfinite(y)))

    # Full-f32 reference (same math as the PyTorch 1x1 conv with bias).
    ref = jnp.einsum("bchw,oc->bohw", x, w.reshape(Cout, Cin)) \
        + b.reshape(1, Cout, 1, 1)
    assert bool(jnp.allclose(y, ref, atol=1e-2, rtol=1e-2)), float(
        jnp.max(jnp.abs(y - ref)))

    print("KERNEL_OK")
</pallas_src>

<mosaic_0001>
module attributes {stable_mosaic.version = 11 : i64} {
  func.func @_out_conv_kernel(%arg0: i32, %arg1: i32, %arg2: memref<1x8x256xf32, #tpu.memory_space<vmem>>, %arg3: memref<2x8xf32, #tpu.memory_space<vmem>>, %arg4: memref<2x1xf32, #tpu.memory_space<vmem>>, %arg5: memref<1x2x256xf32, #tpu.memory_space<vmem>>) attributes {dimension_semantics = [#tpu.dimension_semantics<parallel>, #tpu.dimension_semantics<parallel>], iteration_bounds = array<i64: 2, 1>, scalar_prefetch = 0 : i64, scratch_operands = 0 : i64, tpu.core_type = #tpu.core_type<tc>, window_params = [{transform_indices = @transform_0, window_bounds = array<i64: 1, 8, 256>}, {pipeline_mode = #tpu.pipeline_mode<synchronous>, transform_indices = @transform_1, window_bounds = array<i64: 2, 8>}, {pipeline_mode = #tpu.pipeline_mode<synchronous>, transform_indices = @transform_2, window_bounds = array<i64: 2, 1>}, {transform_indices = @transform_3, window_bounds = array<i64: 1, 2, 256>}]} {
    %c0 = arith.constant 0 : index
    %c0_0 = arith.constant 0 : index
    %0 = vector.load %arg3[%c0, %c0_0] : memref<2x8xf32, #tpu.memory_space<vmem>>, vector<2x8xf32>
    %c0_1 = arith.constant 0 : index
    %c0_2 = arith.constant 0 : index
    %c0_3 = arith.constant 0 : index
    %1 = vector.load %arg2[%c0_1, %c0_2, %c0_3] : memref<1x8x256xf32, #tpu.memory_space<vmem>>, vector<1x8x256xf32>
    %2 = vector.shape_cast %1 : vector<1x8x256xf32> to vector<8x256xf32>
    %cst = arith.constant dense<0.000000e+00> : vector<2x256xf32>
    %3 = tpu.matmul %0, %2, %cst {dimension_numbers = #tpu.dot_dimension_numbers<[1], [0], [0], [1], [0, 0, 1, 1], [], []>} : vector<2x8xf32>, vector<8x256xf32>, vector<2x256xf32> -> vector<2x256xf32>
    %c0_4 = arith.constant 0 : index
    %c0_5 = arith.constant 0 : index
    %4 = vector.load %arg4[%c0_4, %c0_5] : memref<2x1xf32, #tpu.memory_space<vmem>>, vector<2x1xf32>
    %5 = vector.broadcast %4 : vector<2x1xf32> to vector<2x256xf32>
    %6 = arith.addf %3, %5 : vector<2x256xf32>
    %c0_6 = arith.constant 0 : index
    %c0_7 = arith.constant 0 : index
    %c0_8 = arith.constant 0 : index
    %7 = vector.load %arg5[%c0_6, %c0_7, %c0_8] : memref<1x2x256xf32, #tpu.memory_space<vmem>>, vector<1x2x256xf32>
    %8 = vector.shape_cast %7 : vector<1x2x256xf32> to vector<2x256xf32>
    %9 = vector.shape_cast %6 : vector<2x256xf32> to vector<1x2x256xf32>
    tpu.vector_store %arg5[%c0_6, %c0_7, %c0_8], %9 {strides = array<i32>} : memref<1x2x256xf32, #tpu.memory_space<vmem>>, vector<1x2x256xf32>,
    return
  }
  func.func @transform_0(%arg0: i32, %arg1: i32) -> (i32, i32, i32) {
    %c0_i32 = arith.constant 0 : i32
    %c0_i32_0 = arith.constant 0 : i32
    return %arg0, %c0_i32, %arg1 : i32, i32, i32
  }
  func.func @transform_1(%arg0: i32, %arg1: i32) -> (i32, i32) {
    %c0_i32 = arith.constant 0 : i32
    %c0_i32_0 = arith.constant 0 : i32
    %c0_i32_1 = arith.constant 0 : i32
    return %c0_i32, %c0_i32_0 : i32, i32
  }
  func.func @transform_2(%arg0: i32, %arg1: i32) -> (i32, i32) {
    %c0_i32 = arith.constant 0 : i32
    %c0_i32_0 = arith.constant 0 : i32
    %c0_i32_1 = arith.constant 0 : i32
    return %c0_i32, %c0_i32_0 : i32, i32
  }
  func.func @transform_3(%arg0: i32, %arg1: i32) -> (i32, i32, i32) {
    %c0_i32 = arith.constant 0 : i32
    %c0_i32_0 = arith.constant 0 : i32
    return %arg0, %c0_i32, %arg1 : i32, i32, i32
  }
}

</mosaic_0001>

<bundles_post_ra>
// kernel: unet_out_block_forward.1
= control target key start
LH: loop header
LB: loop body
LE: loop exit
PB: predicated region body
PF: predicated region fallthrough
CT: control target
= control target key end

     0   :  { %s443_s12 = smov 0   ;;  %s445_s13 = smov 0   ;;  %s482_s0 = inlined_call_operand.vmem [shape: f32[2,8,256], index: 0, kind: input, shape index: {}]   ;;  %s483_s1 = inlined_call_operand.vmem [shape: f32[2,8], index: 1, kind: input, shape index: {}]   ;;  %s484_s2 = inlined_call_operand.vmem [shape: f32[2,1], index: 2, kind: input, shape index: {}]   ;;  %s485_s3 = inlined_call_operand.vmem [shape: f32[2,2,256], index: 3, kind: output, shape index: {}]  }
   0x1   :  { %s447_s14 = smov 0  }
   0x2 LB: > { %s25_s15 = sadd.s32 1, %s416_s13  ;;  %p361_p0 = scmp.ge.s32.totalorder %s420_s14, 1  ;;  %s420_s14 = sphi %s447_s14, %s13_s14   ;;  %s416_s13 = sphi %s445_s13, %s487_s13   ;;  %s412_s12 = sphi %s443_s12, %s486_s12  }
   0x3   : > { %p27_p1 = scmp.ge.s32.totalorder %s25_s15, 2  ;;  %p158_p2 = scmp.lt.s32.totalorder %s420_s14, 3 }
   0x5   : > { %s489_s15 = smov (%p27_p1, %s25_s15), 0  ;;  %p159_p3 = pnand %p361_p0, %p158_p2 }
   0x6   : > { %p191_p4 = scmp.lt.s32.totalorder (!%p159_p3), %s412_s12, 1 }
   0x7   : > { %162 = sbr.rel (%p159_p3) target bundleno = 149 (0x95), region = 32 }
   0xc   : > { %v422_v0 = vmov 0   ;;  %v213_v1 = vld [vmem:[%s484_s2] sm:$0x3]  ;;  %s491_s12 = smov (!%p191_p4, %s412_s12), 1  ;;  %vm219_vm0 = vcmask 64512   ;;  %vm266_vm1 = vcmask 1041408  }
   0xd   : > { %397 = vset.pattern.permute.xlu0 %v422_v0  ;;  %s370_s18 = sshll.u32 %s491_s12, 4  ;;  %v210_v2 = vld [vmem:[%s483_s1] sm:$0x3]  ;;  %s371_s24 = sshll.u32 %s491_s12, 2 }
   0xe   : > { %216 = vperm.xlu0 %397, %v213_v1   ;;  %s198_s21 = scalar_lea.vmem %s482_s0, %s370_s18  ;;  %s208_s27 = scalar_lea.vmem %s485_s3, %s371_s24 }
   0xf   : > { %v211_v3 = vld [vmem:[%s198_s21] sm:$0xff]  ;;  %v212_v4 = vld [vmem:[%s198_s21 + $0x8] sm:$0xff] }
  0x10   : > { %238 = vmatpush.msra.mxu0 %v211_v3  ;;  %258 = vmatpush.msra.mxu1 %v212_v4 }
  0x11   : > { %366 = vmatmul.msk.f32.vlgmr.msra.gmra.mxu0 %vm219_vm0, %v210_v2  ;;  %367 = vmatmul.msk.f32.vlgmr.msra.gmra.mxu1 %vm219_vm0, %v210_v2 }
  0x80   : > { %v217_v5 = vpop.permute.xlu0 %216 }
  0x8e   : > { %v240_v6 = vpop.f32.mrf.mxu0  ;;  %v260_v7 = vpop.f32.mrf.mxu1 }
  0x8f   : > { %v261_v8 = vadd.f32 %v260_v7, %v217_v5  ;;  %v241_v9 = vadd.f32 %v240_v6, %v217_v5 }
  0x91   : > { %v265_v10 = vrot.slane %v261_v8, 6 }
  0x93   : > { %v267_v11 = vsel %vm266_vm1, %v241_v9, %v265_v10 }
  0x94   : > { %269 = vst [vmem:[%s208_s27] sm:$0xf] %v267_v11 }
  0x95 PF: > { %s13_s14 = sadd.s32 1, %s420_s14   ;;  %s486_s12 = smov %s416_s13 }
  0x96   : > { %p10_p5 = scmp.ge.s32.totalorder %s13_s14, 4   ;;  %s487_s13 = smov %s489_s15 }
  0x98   :  { %12 = sbr.rel (!%p10_p5) target bundleno = 2 (0x2), region = 62 }

</bundles_post_ra>
